<compile_context>
chip_gen: v6e
topology: v6e:2x2x1
jax: 0.10.0
libtpu: 0.0.40
codegen_flags: <defaults>
</compile_context>

<pallas_src>
import functools

import jax
import jax.numpy as jnp
from jax.experimental import pallas as pl
from jax.experimental.pallas import tpu as pltpu


_LANE = 128
_TARGET_BLOCK_BYTES = 4 << 20   # ~4 MiB per input block; x2 double-buffering fits
                                # v5e's 16 MiB scoped-VMEM default with headroom.
_MAX_TILE_HW = 128 * 1024       # cap on the lane (spatial) extent of one block


def _cdiv(a, b):
    return -(-a // b)


def _round_up(a, b):
    return _cdiv(a, b) * b


def _rowsum_kernel(x_ref, o_ref, *, hw, tile_hw):
    """Accumulate row sums of a (rows, tile_hw) block directly into o_ref.

    The hw (reduction) grid axis is last / "arbitrary", and the output block
    index ignores it, so o_ref stays resident in VMEM across the reduction
    (accumulator pattern, no scratch buffer needed).
    """
    k = pl.program_id(1)

    @pl.when(k == 0)
    def _():
        o_ref[...] = jnp.zeros_like(o_ref)

    x = x_ref[...].astype(jnp.float32)   # f32 accumulation (VPU-legal on v5e too)
    if hw % tile_hw != 0:
        # Ragged last spatial chunk: zero the out-of-bounds lanes so undefined
        # padded input data never reaches the row sums.
        col = k * tile_hw + jax.lax.broadcasted_iota(jnp.int32, x.shape, 1)
        x = jnp.where(col < hw, x, 0.0)

    o_ref[...] += jnp.sum(x, axis=-1, keepdims=True)


def _pick_tiles(n_rows, hw, itemsize):
    """Adaptive, dtype-aware block sizing targeting ~4 MiB input blocks."""
    # Sub-32-bit dtypes pack along sublanes: 8 rows (f32) / 16 (bf16) / 32 (i8).
    base_rows = max(8, 32 // max(int(itemsize), 1))

    # Spatial (lane) tile: one chunk if it fits under the cap, otherwise
    # balanced chunks so the last chunk is nearly full (no gross over-read).
    hw_r = _round_up(hw, _LANE)
    if hw_r <= _MAX_TILE_HW:
        tile_hw = hw_r
    else:
        n_chunks = _cdiv(hw, _MAX_TILE_HW)
        tile_hw = _round_up(_cdiv(hw, n_chunks), _LANE)

    # Row tile: scale up (multiple of base_rows) until the block is ~4 MiB.
    rows = _TARGET_BLOCK_BYTES // (tile_hw * itemsize)
    rows = max(base_rows, (rows // base_rows) * base_rows)
    rows = min(rows, _round_up(n_rows, base_rows))
    return rows, tile_hw


def sum_softmax(x):
    """softmax(sum(x, [2, 3]), axis=1) for x of shape (N, C, H, W)."""
    N, C, H, W = x.shape
    R = N * C
    HW = H * W
    itemsize = jnp.dtype(x.dtype).itemsize

    rows, tile_hw = _pick_tiles(R, HW, itemsize)
    grid = (_cdiv(R, rows), _cdiv(HW, tile_hw))

    # (N, C, H, W) -> (N*C, H*W): contiguous, metadata-only reshape.
    x2 = x.reshape(R, HW)

    kernel = functools.partial(_rowsum_kernel, hw=HW, tile_hw=tile_hw)

    sums = pl.pallas_call(
        kernel,
        out_shape=jax.ShapeDtypeStruct((R, 1), jnp.float32),
        grid_spec=pltpu.PrefetchScalarGridSpec(
            num_scalar_prefetch=0,
            grid=grid,
            in_specs=[pl.BlockSpec((rows, tile_hw), lambda r, k: (r, k))],
            out_specs=pl.BlockSpec((rows, 1), lambda r, k: (r, 0)),
        ),
        compiler_params=pltpu.CompilerParams(
            dimension_semantics=("parallel", "arbitrary")),
    )(x2)

    # Tiny (N, C) channel softmax: plain JAX, exact division (a second Mosaic
    # launch for an (N, C) tensor costs more than the softmax itself).
    s_nc = sums.reshape(N, C)
    return jax.nn.softmax(s_nc, axis=1).astype(x.dtype)


if __name__ == "__main__":
    key = jax.random.PRNGKey(0)
    x = jax.random.normal(key, (2, 4, 16, 16), dtype=jnp.float32)

    out = jax.jit(sum_softmax)(x)
    jax.block_until_ready(out)

    ref = jax.nn.softmax(jnp.sum(x, axis=(2, 3)), axis=1)
    assert out.shape == (2, 4)
    assert jnp.allclose(out, ref, atol=1e-5, rtol=1e-5)

    # Extra check: ragged rows (N*C=6) and ragged spatial extent (H*W=35)
    # exercise the in-kernel masking / clipped-writeback paths.
    y = jax.random.normal(jax.random.PRNGKey(1), (2, 3, 5, 7), dtype=jnp.float32)
    out2 = jax.jit(sum_softmax)(y)
    jax.block_until_ready(out2)
    ref2 = jax.nn.softmax(jnp.sum(y, axis=(2, 3)), axis=1)
    assert jnp.allclose(out2, ref2, atol=1e-5, rtol=1e-5)

    print("KERNEL_OK")
</pallas_src>

<mosaic_0001>
module attributes {stable_mosaic.version = 11 : i64} {
  func.func @_rowsum_kernel(%arg0: i32, %arg1: i32, %arg2: memref<8x256xf32, #tpu.memory_space<vmem>>, %arg3: memref<8x1xf32, #tpu.memory_space<vmem>>) attributes {dimension_semantics = [#tpu.dimension_semantics<parallel>, #tpu.dimension_semantics<arbitrary>], iteration_bounds = array<i64: 1, 1>, scalar_prefetch = 0 : i64, scratch_operands = 0 : i64, tpu.core_type = #tpu.core_type<tc>, window_params = [{transform_indices = @transform_0, window_bounds = array<i64: 8, 256>}, {transform_indices = @transform_1, window_bounds = array<i64: 8, 1>}]} {
    %c0_i32 = arith.constant 0 : i32
    %0 = arith.cmpi eq, %arg1, %c0_i32 : i32
    %1 = arith.extui %0 : i1 to i32
    %c0_i32_0 = arith.constant 0 : i32
    %2 = arith.cmpi ne, %1, %c0_i32_0 : i32
    scf.if %2 {
      %cst_6 = arith.constant 0.000000e+00 : f32
      %9 = vector.broadcast %cst_6 : f32 to vector<8x1xf32>
      %c0_7 = arith.constant 0 : index
      %c0_8 = arith.constant 0 : index
      %10 = vector.load %arg3[%c0_7, %c0_8] : memref<8x1xf32, #tpu.memory_space<vmem>>, vector<8x1xf32>
      tpu.vector_store %arg3[%c0_7, %c0_8], %9 {strides = array<i32>} : memref<8x1xf32, #tpu.memory_space<vmem>>, vector<8x1xf32>,
    } else {
    }
    %c0 = arith.constant 0 : index
    %c0_1 = arith.constant 0 : index
    %3 = vector.load %arg2[%c0, %c0_1] : memref<8x256xf32, #tpu.memory_space<vmem>>, vector<8x256xf32>
    %c0_2 = arith.constant 0 : index
    %c0_3 = arith.constant 0 : index
    %4 = vector.load %arg3[%c0_2, %c0_3] : memref<8x1xf32, #tpu.memory_space<vmem>>, vector<8x1xf32>
    %cst = arith.constant dense<0.000000e+00> : vector<8xf32>
    %5 = vector.multi_reduction <add>, %3, %cst [1] : vector<8x256xf32> to vector<8xf32>
    %6 = vector.shape_cast %5 : vector<8xf32> to vector<8x1xf32>
    %7 = arith.addf %4, %6 : vector<8x1xf32>
    %c0_4 = arith.constant 0 : index
    %c0_5 = arith.constant 0 : index
    %8 = vector.load %arg3[%c0_4, %c0_5] : memref<8x1xf32, #tpu.memory_space<vmem>>, vector<8x1xf32>
    tpu.vector_store %arg3[%c0_4, %c0_5], %7 {strides = array<i32>} : memref<8x1xf32, #tpu.memory_space<vmem>>, vector<8x1xf32>,
    return
  }
  func.func @transform_0(%arg0: i32, %arg1: i32) -> (i32, i32) {
    %c0_i32 = arith.constant 0 : i32
    return %arg0, %arg1 : i32, i32
  }
  func.func @transform_1(%arg0: i32, %arg1: i32) -> (i32, i32) {
    %c0_i32 = arith.constant 0 : i32
    %c0_i32_0 = arith.constant 0 : i32
    return %arg0, %c0_i32 : i32, i32
  }
}

</mosaic_0001>

<bundles_post_ra>
// kernel: sum_softmax.1
= control target key start
LH: loop header
LB: loop body
LE: loop exit
PB: predicated region body
PF: predicated region fallthrough
CT: control target
= control target key end

     0   :  { %vm12_vm0 = vcmask 7168   ;;  %v28_v2 = vmov 0.0   ;;  %s54_s0 = inlined_call_operand.vmem [shape: f32[8,256], index: 0, kind: input, shape index: {}]   ;;  %s55_s1 = inlined_call_operand.vmem [shape: f32[8,1], index: 1, kind: output, shape index: {}]  }
   0x1   :  { %v14_v0 = vld [vmem:[%s54_s0] sm:$0xff]  ;;  %v15_v1 = vld [vmem:[%s54_s0 + $0x8] sm:$0xff]  ;;  %13 = vst.msk [vmem:[%s55_s1] sm:$0xff] %vm12_vm0, %v28_v2 }
   0x2   :  { %v17_v3 = vadd.f32 %v15_v1, %v14_v0 }
   0x4   :  { %18 = vadd.xlane.f32.xlu0 %v17_v3 }
   0x8   :  { %v16_v4 = vld [vmem:[%s55_s1] sm:$0xff] }
  0x8d   :  { %v19_v5 = vpop.xlane.xlu0 %18 }
  0x8e   :  { %v20_v6 = vadd.f32 %v19_v5, %v16_v4 }
  0x90   :  { %22 = vst.msk [vmem:[%s55_s1] sm:$0xff] %vm12_vm0, %v20_v6 }

</bundles_post_ra>
